<compile_context>
chip_gen: v5e
topology: v5e:2x2
jax: 0.10.0
libtpu: 0.0.40
codegen_flags: <defaults>
</compile_context>

<pallas_src>
import jax
import jax.numpy as jnp
from jax.experimental import pallas as pl
from jax.experimental.pallas import tpu as pltpu


def _identity_copy_kernel(dx_ref, out_ref):
    # Forward semantics of SubspaceBase: return Dx unchanged.
    out_ref[...] = dx_ref[...]


_LANES = 128
# Row tile for the large-array gridded path: (8192, 128) f32 = 4 MiB per tile.
_ROW_TILE = 8192
# Below this total size, a single non-gridded VMEM block is used (2x this in
# VMEM for in+out, still well under v5e's 16 MiB default scoped limit).
_SMALL_BYTES = 4 << 20


def _cost(flat):
    nbytes = int(flat.size) * int(jnp.dtype(flat.dtype).itemsize)
    # Pure copy: read + write of the full parameter, zero compute.
    return pl.CostEstimate(flops=0, transcendentals=0, bytes_accessed=2 * nbytes)


def _single_block_copy(flat):
    return pl.pallas_call(
        _identity_copy_kernel,
        out_shape=jax.ShapeDtypeStruct(flat.shape, flat.dtype),
        in_specs=[pl.BlockSpec(memory_space=pltpu.MemorySpace.VMEM)],
        out_specs=pl.BlockSpec(memory_space=pltpu.MemorySpace.VMEM),
        cost_estimate=_cost(flat),
    )(flat)


def _gridded_copy(flat, row_tile):
    rows, cols = flat.shape
    return pl.pallas_call(
        _identity_copy_kernel,
        out_shape=jax.ShapeDtypeStruct(flat.shape, flat.dtype),
        grid=(pl.cdiv(rows, row_tile),),
        in_specs=[pl.BlockSpec((row_tile, cols), lambda i: (i, 0))],
        out_specs=pl.BlockSpec((row_tile, cols), lambda i: (i, 0)),
        compiler_params=pltpu.CompilerParams(
            dimension_semantics=("parallel",)),
        cost_estimate=_cost(flat),
    )(flat)


def subspace_base_forward(dx: jax.Array, x=None, *, use_kernel: bool = False) -> jax.Array:
    """Pallas implementation of SubspaceBase.forward: returns Dx, ignoring x."""
    del x  # forward ignores the input, returning the parameter directly

    if not use_kernel:
        # Preferred path: the op is a pure identity on the parameter — no
        # kernel, no HBM traffic.
        return dx

    orig_shape = dx.shape
    total = dx.size
    nbytes = int(total) * int(jnp.dtype(dx.dtype).itemsize)

    if total % _LANES == 0:
        # Lane-dense view: last dim = 128 -> unmasked full-lane stores and no
        # (8,128) tile-padding waste.  (32, 8) f32 becomes (2, 128).
        flat = dx.reshape(total // _LANES, _LANES)
        if nbytes > _SMALL_BYTES:
            out = _gridded_copy(flat, _ROW_TILE)
        else:
            out = _single_block_copy(flat)
    else:
        # Not divisible by 128: keep the 2-D parameter layout.
        flat = dx.reshape(orig_shape) if dx.ndim == 2 else dx.reshape(total, 1)
        if nbytes > _SMALL_BYTES and flat.shape[0] >= 16:
            # Grid over rows so large non-lane-dense params never hit an
            # unbounded single-VMEM block.  Row tile sized to ~4 MiB and kept
            # a multiple of 8 (sublane constraint).
            # TODO(synk): pad-to-128 lane-dense path for better store density.
            cols = flat.shape[1]
            bytes_per_row = cols * int(jnp.dtype(flat.dtype).itemsize)
            row_tile = max(8, ((_SMALL_BYTES // max(bytes_per_row, 1)) // 8) * 8)
            row_tile = min(row_tile, (flat.shape[0] // 8) * 8)
            out = _gridded_copy(flat, row_tile)
        else:
            out = _single_block_copy(flat)

    return out.reshape(orig_shape)


if __name__ == "__main__":
    key = jax.random.PRNGKey(0)
    k_dx, k_x = jax.random.split(key)

    input_size, class_num = 32, 8
    batch = 2

    # Deterministic parameter init (synthetic, no checkpoint load).
    Dx = jax.random.normal(k_dx, (input_size, class_num), dtype=jnp.float32)
    # Example input (ignored by forward, kept for signature parity).
    x = jax.random.normal(k_x, (batch, input_size), dtype=jnp.float32)

    # Default (fast) path: no kernel, returns the parameter directly.
    out_fast = jax.block_until_ready(subspace_base_forward(Dx, x))

    # Explicit kernel-boundary path: exercises the Pallas copy kernel once.
    out_kernel = jax.block_until_ready(subspace_base_forward(Dx, x, use_kernel=True))

    assert out_fast.shape == (input_size, class_num)
    assert out_kernel.shape == (input_size, class_num)
    # No aliasing/donation: Dx is still valid, compare directly against it.
    assert jnp.array_equal(out_fast, Dx)
    assert jnp.allclose(out_kernel, Dx)

    print("KERNEL_OK")
</pallas_src>

<mosaic_0001>
module attributes {stable_mosaic.version = 11 : i64} {
  func.func @_identity_copy_kernel(%arg0: memref<2x128xf32, #tpu.memory_space<vmem>>, %arg1: memref<2x128xf32, #tpu.memory_space<vmem>>) attributes {dimension_semantics = [], scalar_prefetch = 0 : i64, scratch_operands = 0 : i64, tpu.core_type = #tpu.core_type<tc>} {
    %c0 = arith.constant 0 : index
    %c0_0 = arith.constant 0 : index
    %0 = vector.load %arg0[%c0, %c0_0] : memref<2x128xf32, #tpu.memory_space<vmem>>, vector<2x128xf32>
    %c0_1 = arith.constant 0 : index
    %c0_2 = arith.constant 0 : index
    %1 = vector.load %arg1[%c0_1, %c0_2] : memref<2x128xf32, #tpu.memory_space<vmem>>, vector<2x128xf32>
    tpu.vector_store %arg1[%c0_1, %c0_2], %0 {strides = array<i32>} : memref<2x128xf32, #tpu.memory_space<vmem>>, vector<2x128xf32>,
    return
  }
}

</mosaic_0001>

<bundles_post_ra>
// kernel: tpu_custom_call.1
= control target key start
LH: loop header
LB: loop body
LE: loop exit
PB: predicated region body
PF: predicated region fallthrough
CT: control target
= control target key end

     0   :  { %6 = vsyncpa [#allocation3], 0  ;;  %s114_s0 = inlined_call_operand.hbm [shape: f32[2,128], index: 0, kind: input, shape index: {}]   ;;  %s115_s1 = inlined_call_operand.hbm [shape: f32[2,128], index: 1, kind: output, shape index: {}]  }
   0x1   :  { %7 = vsyncpa [#allocation4], 0  ;;  %s13_s8 = sshll.u32 %s114_s0, 4  ;;  %s96_s9 = smov [#allocation2]   ;;  %s14_s8 = int_to_ptr.hbm [resolvable:$true] %s13_s8 }
   0x2   :  { %s15_s10 = sshll.u32 %s96_s9, 4  ;;  %s16_s10 = int_to_ptr.vmem [resolvable:$true] %s15_s10 }
   0x3   :  { %18 = dma.hbm_to_vmem [thread:$0]  %s14_s8, 32, %s16_s10, [#allocation3]  }
   0x4   :  { %92 = dma.done.wait [#allocation3], 32  }
   0x5   :  { %93 = vsyncadd [#allocation3], 4294967264  ;;  %s97_s11 = smov [#allocation5]   ;;  %s32_s15 = sshll.u32 %s115_s1, 4  ;;  %v23_v0 = vld [vmem:[#allocation2] sm:$0x3]  ;;  %s33_s15 = int_to_ptr.hbm [resolvable:$true] %s32_s15 }
   0x6   :  { %s30_s12 = sshll.u32 %s97_s11, 4  ;;  %24 = vst [vmem:[#allocation5] sm:$0x3] %v23_v0  ;;  %s31_s12 = int_to_ptr.vmem [resolvable:$true] %s30_s12 }
   0x7   :  { %35 = dma.vmem_to_hbm [thread:$0]  %s31_s12, 32, %s33_s15, [#allocation4]  }
   0x8   :  { %94 = dma.done.wait [#allocation4], 32  }
   0x9   :  { %95 = vsyncadd [#allocation4], 4294967264 }
   0xa   :  { %40 = vsyncpa [#allocation3], 1 }
   0xb   :  { %41 = vsyncpa [#allocation4], 1 }

</bundles_post_ra>
